<compile_context>
chip_gen: v6e
topology: v6e:2x2x1
jax: 0.10.0
libtpu: 0.0.40
codegen_flags: <defaults>
</compile_context>

<pallas_src>
import functools

import jax
import jax.numpy as jnp
from jax import lax
from jax.experimental import pallas as pl
from jax.experimental.pallas import tpu as pltpu


def _neg_focal_kernel(out_ref, tgt_ref, part_ref, *, rows, cols, rt, ct,
                      focal_factor):
    """One grid step = one (rt, ct) block of the flattened heatmaps.

    out_ref, tgt_ref : (rt, ct) blocks of prediction / target (input dtype)
    part_ref         : (8, 128) f32 output block; the partial sum lands in [0,0]
    """
    o = out_ref[...].astype(jnp.float32)
    g = tgt_ref[...].astype(jnp.float32)

    # Keep log(1 - o) finite even if the upstream sigmoid saturates.
    o = jnp.minimum(o, 1.0 - 1e-6)

    neg = (jnp.log(1.0 - o)
           * lax.integer_pow(o, focal_factor)
           * lax.integer_pow(1.0 - g, 4))

    # Mask out-of-bounds portions of partial edge blocks (static branches).
    if rows % rt != 0:
        r = pl.program_id(0) * rt + lax.broadcasted_iota(jnp.int32, neg.shape, 0)
        neg = jnp.where(r < rows, neg, 0.0)
    if cols % ct != 0:
        c = pl.program_id(1) * ct + lax.broadcasted_iota(jnp.int32, neg.shape, 1)
        neg = jnp.where(c < cols, neg, 0.0)

    s = jnp.sum(neg)
    r0 = lax.broadcasted_iota(jnp.int32, (8, 128), 0)
    c0 = lax.broadcasted_iota(jnp.int32, (8, 128), 1)
    part_ref[...] = jnp.where((r0 == 0) & (c0 == 0), s, 0.0)


def _choose_view_and_tiles(B, C, H, W, itemsize):
    """Pick a free 2-D re-view (R, N) of the contiguous NCHW buffer and a
    (rt, ct) block of roughly 2 MiB per input with dense vregs."""
    T = B * C * H * W
    HW = H * W
    row_align = 16 if itemsize < 4 else 8
    target_elems = max(8 * 128, (2 << 20) // itemsize)     # ~2 MiB per block

    # Preferred: lane axis a multiple of 128, many rows (flatten B and C in).
    L = None
    for cand in (512, 256, 128):
        if T % cand == 0 and T // cand >= row_align:
            L = cand
            break
    if L is None:
        for cand in (512, 256, 128):
            if T % cand == 0:
                L = cand
                break

    if L is not None:
        R, N = T // L, L
        ct = N
        if R <= row_align:
            rt = R                                          # full (tiny input)
        else:
            rt = (target_elems // ct) // row_align * row_align
            rt = max(row_align, min(rt, (R // row_align) * row_align))
    else:
        # Fallback: lane axis = H*W (not a multiple of 128); tile lanes.
        R, N = B * C, HW
        rt = R                                              # full row extent
        if N <= 2048:
            ct = N
        else:
            ct = (target_elems // max(R, 1)) // 128 * 128
            ct = max(512, ct)
            if ct >= N:
                ct = N
    return R, N, rt, ct


@functools.partial(jax.jit, static_argnames=("focal_factor",))
def fast_focal_loss(out, target, ind, mask, cat, focal_factor=2):
    """JAX/Pallas equivalent of FastFocalLoss.forward (NCHW inputs)."""
    B, C, H, W = out.shape
    HW = H * W
    focal_factor = int(focal_factor)
    itemsize = jnp.dtype(out.dtype).itemsize

    # ---- Positive term + num_pos: tiny (B*M) data-dependent gather -> XLA.
    # Indices are clipped so padded (masked) entries cannot go out of bounds.
    ind_i = jnp.clip(ind.astype(jnp.int32), 0, HW - 1)
    cat_i = jnp.clip(cat.astype(jnp.int32), 0, C - 1)
    flat_idx = cat_i * HW + ind_i                                       # (B, M)
    pos_pred = jnp.take_along_axis(out.reshape(B, C * HW), flat_idx,
                                   axis=1).astype(jnp.float32)          # (B, M)
    mask_f = mask.astype(jnp.float32)
    num_pos = jnp.sum(mask_f)
    pos_pred_safe = jnp.maximum(pos_pred, 1e-12)   # masked padded peaks may be 0
    pos_loss = jnp.sum(jnp.log(pos_pred_safe)
                       * lax.integer_pow(1.0 - pos_pred, focal_factor)
                       * mask_f)

    # ---- Negative term: streamed Pallas reduction over all B*C*H*W elements.
    R, N, rt, ct = _choose_view_and_tiles(B, C, H, W, itemsize)
    out2d = out.reshape(R, N)      # free re-views of the contiguous NCHW buffer
    tgt2d = target.reshape(R, N)
    gi = -(-R // rt)
    gj = -(-N // ct)

    kernel = functools.partial(_neg_focal_kernel, rows=R, cols=N, rt=rt, ct=ct,
                               focal_factor=focal_factor)

    heat_spec = pl.BlockSpec((rt, ct), lambda i, j: (i, j))
    # TODO(synk): try pipeline_mode=pl.Buffered(3) on heat_spec if a profile
    # still shows exposed DMA and VMEM headroom allows (watch v7x's 64 MiB).
    part_spec = pl.BlockSpec((None, None, 8, 128), lambda i, j: (i, j, 0, 0))

    # VMEM budget: 2 inputs x 2 pipeline buffers x block + output + headroom,
    # capped at 75% of the physical per-core VMEM reported by the runtime.
    block_bytes = rt * ct * itemsize
    est = 2 * 2 * block_bytes + 2 * 8 * 128 * 4 + (1 << 20)
    try:
        cap = int(getattr(pltpu.get_tpu_info(), "vmem_capacity_bytes", 64 << 20))
    except Exception:
        cap = 64 << 20
    vmem_limit = int(min(max(4 * est, 32 << 20), int(0.75 * cap)))

    partials = pl.pallas_call(
        kernel,
        out_shape=jax.ShapeDtypeStruct((gi, gj, 8, 128), jnp.float32),
        grid_spec=pl.GridSpec(
            grid=(gi, gj),
            in_specs=[heat_spec, heat_spec],
            out_specs=part_spec,
        ),
        compiler_params=pltpu.CompilerParams(
            # Each grid step owns its own output block -> fully parallel grid;
            # v7x megacore can split the steps across both TensorCores.
            dimension_semantics=("parallel", "parallel"),
            vmem_limit_bytes=vmem_limit),
    )(out2d, tgt2d)

    neg_loss = jnp.sum(partials)
    denom = jnp.maximum(num_pos, 1.0)
    return jnp.where(num_pos == 0, -neg_loss, -(pos_loss + neg_loss) / denom)


def _reference_loss(out, target, ind, mask, cat, focal_factor=2):
    """Pure-JAX re-implementation of the PyTorch forward, for verification."""
    maskf = mask.astype(jnp.float32)
    gt = (1.0 - target) ** 4
    neg = (jnp.log(1.0 - out) * out ** focal_factor * gt).sum()
    B, C, H, W = out.shape
    feat = jnp.transpose(out, (0, 2, 3, 1)).reshape(B, H * W, C)
    pos_pix = jnp.take_along_axis(feat, ind[:, :, None], axis=1)             # (B, M, C)
    pos_pred = jnp.take_along_axis(pos_pix, cat[:, :, None], axis=2)[..., 0]  # (B, M)
    num_pos = maskf.sum()
    pos = (jnp.log(pos_pred) * (1.0 - pos_pred) ** focal_factor * maskf).sum()
    return jnp.where(num_pos == 0, -neg, -(pos + neg) / num_pos)


if __name__ == "__main__":
    key = jax.random.PRNGKey(0)
    B, C, H, W, M = 2, 4, 16, 16, 8

    k1, k2, k3, k4, k5 = jax.random.split(key, 5)
    # out is typically a sigmoid heatmap in (0, 1); target a gaussian heatmap in [0, 1).
    out = jax.nn.sigmoid(jax.random.normal(k1, (B, C, H, W), jnp.float32))
    target = jax.nn.sigmoid(jax.random.normal(k2, (B, C, H, W), jnp.float32))
    ind = jax.random.randint(k3, (B, M), 0, H * W, jnp.int32)
    cat = jax.random.randint(k4, (B, M), 0, C, jnp.int32)
    mask = jax.random.randint(k5, (B, M), 0, 2, jnp.int32)

    loss = jax.block_until_ready(fast_focal_loss(out, target, ind, mask, cat))
    ref = jax.block_until_ready(_reference_loss(out, target, ind, mask, cat))

    assert jnp.isfinite(loss), f"non-finite loss: {loss}"
    assert jnp.allclose(loss, ref, rtol=1e-4, atol=1e-5), f"{loss} vs {ref}"
    print("KERNEL_OK")
</pallas_src>

<mosaic_0001>
module attributes {stable_mosaic.version = 11 : i64} {
  func.func @_neg_focal_kernel(%arg0: i32, %arg1: i32, %arg2: memref<8x256xf32, #tpu.memory_space<vmem>>, %arg3: memref<8x256xf32, #tpu.memory_space<vmem>>, %arg4: memref<1x1x8x128xf32, #tpu.memory_space<vmem>>) attributes {dimension_semantics = [#tpu.dimension_semantics<parallel>, #tpu.dimension_semantics<parallel>], iteration_bounds = array<i64: 1, 1>, scalar_prefetch = 0 : i64, scratch_operands = 0 : i64, tpu.core_type = #tpu.core_type<tc>, window_params = [{transform_indices = @transform_0, window_bounds = array<i64: 8, 256>}, {transform_indices = @transform_1, window_bounds = array<i64: 8, 256>}, {transform_indices = @transform_2, window_bounds = array<i64: 1, 1, 8, 128>}]} {
    %c0 = arith.constant 0 : index
    %c0_0 = arith.constant 0 : index
    %0 = vector.load %arg2[%c0, %c0_0] : memref<8x256xf32, #tpu.memory_space<vmem>>, vector<8x256xf32>
    %c0_1 = arith.constant 0 : index
    %c0_2 = arith.constant 0 : index
    %1 = vector.load %arg3[%c0_1, %c0_2] : memref<8x256xf32, #tpu.memory_space<vmem>>, vector<8x256xf32>
    %cst = arith.constant 0.999998986 : f32
    %2 = vector.broadcast %cst : f32 to vector<8x256xf32>
    %3 = arith.minimumf %0, %2 : vector<8x256xf32>
    %cst_3 = arith.constant 1.000000e+00 : f32
    %4 = vector.broadcast %cst_3 : f32 to vector<8x256xf32>
    %5 = arith.subf %4, %3 : vector<8x256xf32>
    %6 = math.log %5 : vector<8x256xf32>
    %7 = arith.mulf %3, %3 : vector<8x256xf32>
    %8 = arith.mulf %6, %7 : vector<8x256xf32>
    %cst_4 = arith.constant 1.000000e+00 : f32
    %9 = vector.broadcast %cst_4 : f32 to vector<8x256xf32>
    %10 = arith.subf %9, %1 : vector<8x256xf32>
    %11 = arith.mulf %10, %10 : vector<8x256xf32>
    %12 = arith.mulf %11, %11 : vector<8x256xf32>
    %13 = arith.mulf %8, %12 : vector<8x256xf32>
    %14 = vector.shape_cast %13 : vector<8x256xf32> to vector<1x8x256xf32>
    %cst_5 = arith.constant dense<0.000000e+00> : vector<1xf32>
    %15 = vector.multi_reduction <add>, %14, %cst_5 [1, 2] : vector<1x8x256xf32> to vector<1xf32>
    %16 = vector.shape_cast %15 : vector<1xf32> to vector<1x1x1xf32>
    %17 = vector.extract %16[0, 0, 0] : f32 from vector<1x1x1xf32>
    %18 = tpu.iota {dimensions = array<i32: 0>} : vector<8x128xi32>
    %19 = tpu.iota {dimensions = array<i32: 1>} : vector<8x128xi32>
    %c0_i32 = arith.constant 0 : i32
    %20 = vector.broadcast %c0_i32 : i32 to vector<8x128xi32>
    %21 = arith.cmpi eq, %18, %20 : vector<8x128xi32>
    %c0_i32_6 = arith.constant 0 : i32
    %22 = vector.broadcast %c0_i32_6 : i32 to vector<8x128xi32>
    %23 = arith.cmpi eq, %19, %22 : vector<8x128xi32>
    %24 = arith.andi %21, %23 : vector<8x128xi1>
    %cst_7 = arith.constant 0.000000e+00 : f32
    %25 = vector.broadcast %17 : f32 to vector<8x128xf32>
    %26 = vector.broadcast %cst_7 : f32 to vector<8x128xf32>
    %27 = arith.select %24, %25, %26 : vector<8x128xi1>, vector<8x128xf32>
    %c0_8 = arith.constant 0 : index
    %c0_9 = arith.constant 0 : index
    %c0_10 = arith.constant 0 : index
    %c0_11 = arith.constant 0 : index
    %28 = vector.load %arg4[%c0_8, %c0_9, %c0_10, %c0_11] : memref<1x1x8x128xf32, #tpu.memory_space<vmem>>, vector<1x1x8x128xf32>
    %29 = vector.shape_cast %28 : vector<1x1x8x128xf32> to vector<8x128xf32>
    %30 = vector.shape_cast %27 : vector<8x128xf32> to vector<1x1x8x128xf32>
    tpu.vector_store %arg4[%c0_8, %c0_9, %c0_10, %c0_11], %30 {strides = array<i32>} : memref<1x1x8x128xf32, #tpu.memory_space<vmem>>, vector<1x1x8x128xf32>,
    return
  }
  func.func @transform_0(%arg0: i32, %arg1: i32) -> (i32, i32) {
    %c0_i32 = arith.constant 0 : i32
    return %arg0, %arg1 : i32, i32
  }
  func.func @transform_1(%arg0: i32, %arg1: i32) -> (i32, i32) {
    %c0_i32 = arith.constant 0 : i32
    return %arg0, %arg1 : i32, i32
  }
  func.func @transform_2(%arg0: i32, %arg1: i32) -> (i32, i32, i32, i32) {
    %c0_i32 = arith.constant 0 : i32
    %c0_i32_0 = arith.constant 0 : i32
    %c0_i32_1 = arith.constant 0 : i32
    return %arg0, %arg1, %c0_i32, %c0_i32_0 : i32, i32, i32, i32
  }
}

</mosaic_0001>

<bundles_post_ra>
// kernel: fast_focal_loss.1
= control target key start
LH: loop header
LB: loop body
LE: loop exit
PB: predicated region body
PF: predicated region fallthrough
CT: control target
= control target key end

     0   :  { %v45_v32 = vlaneseq  ;;  %s95_s0 = inlined_call_operand.vmem [shape: f32[8,256], index: 0, kind: input, shape index: {}]   ;;  %s96_s1 = inlined_call_operand.vmem [shape: f32[8,256], index: 1, kind: input, shape index: {}]   ;;  %s97_s2 = inlined_call_operand.vmem [shape: f32[1,1,8,128], index: 2, kind: output, shape index: {}]  }
   0x1   :  { %v11_v0 = vld [vmem:[%s95_s0] sm:$0xff]  ;;  %v12_v1 = vld [vmem:[%s95_s0 + $0x8] sm:$0xff] }
   0x2   :  { %v15_v2 = vmin.f32 %v11_v0, 0.999999  ;;  %v16_v3 = vmin.f32 %v12_v1, 0.999999  ;;  %v13_v6 = vld [vmem:[%s96_s1] sm:$0xff]  ;;  %v14_v7 = vld [vmem:[%s96_s1 + $0x8] sm:$0xff] }
   0x3   :  { %v27_v8 = vsub.f32 1.0, %v13_v6  ;;  %v28_v9 = vsub.f32 1.0, %v14_v7  ;;  %v46_v33 = vshrl.u32 %v45_v32, 7  ;;  %v48_v34 = vand.u32 127, %v45_v32 }
   0x4   :  { %v17_v4 = vsub.f32 1.0, %v15_v2  ;;  %v18_v5 = vsub.f32 1.0, %v16_v3  ;;  %v23_v12 = vmul.f32 %v15_v2, %v15_v2  ;;  %v24_v14 = vmul.f32 %v16_v3, %v16_v3 }
   0x5   :  { %v29_v10 = vmul.f32 %v27_v8, %v27_v8  ;;  %v30_v11 = vmul.f32 %v28_v9, %v28_v9  ;;  %vm49_vm0 = vcmp.eq.s32.totalorder %v46_v33, 0  ;;  %vm50_vm1 = vcmp.eq.s32.totalorder %v48_v34, 0 }
   0x6   :  { %61 = vlog2.f32 %v17_v4  ;;  %vm51_vm2 = vmand %vm49_vm0, %vm50_vm1 }
   0x7   :  { %63 = vlog2.f32 %v18_v5  ;;  %v31_v17 = vmul.f32 %v29_v10, %v29_v10  ;;  %v32_v19 = vmul.f32 %v30_v11, %v30_v11 }
  0x13   :  { %v62_v13 = vpop.eup %61 }
  0x14   :  { %v64_v15 = vpop.eup %63  ;;  %v20_v16 = vmul.f32 0.6931472, %v62_v13 }
  0x15   :  { %v22_v18 = vmul.f32 0.6931472, %v64_v15 }
  0x16   :  { %v25_v20 = vmul.f32 %v23_v12, %v20_v16 }
  0x17   :  { %v26_v21 = vmul.f32 %v24_v14, %v22_v18 }
  0x18   :  { %v33_v22 = vmul.f32 %v31_v17, %v25_v20 }
  0x19   :  { %v34_v23 = vmul.f32 %v32_v19, %v26_v21 }
  0x1b   :  { %v35_v24 = vadd.f32 %v34_v23, %v33_v22 }
  0x1d   :  { %36 = vadd.xlane.f32.xlu0 %v35_v24 }
  0xa6   :  { %v37_v25 = vpop.xlane.xlu0 %36 }
  0xa7   :  { %v38_v26 = vrot.slane %v37_v25, 4 }
  0xa9   :  { %v39_v27 = vadd.f32 %v38_v26, %v37_v25 }
  0xab   :  { %v40_v28 = vrot.slane %v39_v27, 2 }
  0xad   :  { %v41_v29 = vadd.f32 %v40_v28, %v39_v27 }
  0xaf   :  { %v42_v30 = vrot.slane %v41_v29, 1 }
  0xb1   :  { %v43_v31 = vadd.f32 %v42_v30, %v41_v29 }
  0xb3   :  { %59 = vpush %v43_v31 }
  0xe4   :  { %s60_s0 = spop %59 }
  0xe5   :  { %v52_v35 = vstv %s60_s0 }
  0xe6   :  { %v53_v36 = vsel %vm51_vm2, %v52_v35, 0.0 }
  0xe7   :  { %54 = vst [vmem:[%s97_s2] sm:$0xff] %v53_v36 }

</bundles_post_ra>
